<compile_context>
chip_gen: v5e
topology: v5e:2x2
jax: 0.10.0
libtpu: 0.0.40
codegen_flags: <defaults>
</compile_context>

<pallas_src>
import functools

import jax
import jax.numpy as jnp
from jax.experimental import pallas as pl
from jax.experimental.pallas import tpu as pltpu

# ----------------------------- synthetic config ------------------------------
VOXEL_SIZE = 0.04                     # -> final_size = 4
BACKBONE3D_CHANNELS = (32, 64, 128)   # scales = len(channels) - 1 = 2
MULTI_SCALE = True
NUM_CLASSES = 8
LABEL_SMOOTHING = 1.05
TSDF_LOSS_SPLIT = "none"              # 'pred' i>0 overwrite path not exercised

FINAL_SIZE = int(VOXEL_SIZE * 100)                                  # 4
SCALES = len(BACKBONE3D_CHANNELS) - 1                               # 2
VOXEL_SIZES = [FINAL_SIZE * 2 ** i for i in range(SCALES)][::-1]    # [8, 4]
DECODER_CHANNELS = list(BACKBONE3D_CHANNELS[:-1])[::-1]             # [64, 32]


# --------------------------------- kernel ------------------------------------
def _heads_kernel(x_ref, wt_ref, ws_ref, tsdf_ref, sem_ref, *, label_smoothing):
    # x_ref:    (C, ts)       native channel-major slab, spatial on lanes
    # wt_ref:   (1, C)        TSDF decoder weight (transposed)
    # ws_ref:   (classes, C)  semseg decoder weight (transposed)
    # tsdf_ref: (1, ts)
    # sem_ref:  (classes, ts)
    x = x_ref[...]
    t = jnp.dot(wt_ref[...], x, preferred_element_type=jnp.float32)   # (1, ts)
    s = jnp.dot(ws_ref[...], x, preferred_element_type=jnp.float32)   # (classes, ts)
    tsdf_ref[...] = (jnp.tanh(t) * label_smoothing).astype(tsdf_ref.dtype)
    sem_ref[...] = s.astype(sem_ref.dtype)


def _spatial_tile(dhw, target=2048):
    """Pick a lane-dense spatial tile; caller pads if it doesn't divide."""
    if dhw <= target:
        return dhw                     # full extent (allowed even if <128)
    start = target - (target % 128)
    for t in range(start, 127, -128):  # largest multiple-of-128 divisor
        if dhw % t == 0:
            return t
    return start                       # no divisor -> pad up to multiple of tile


def _run_scale(x_ncdhw, w_tsdf, w_semseg, *, label_smoothing, max_spatial_tile=2048):
    """Fused TSDF + SemSeg 1x1x1 decoders for one pyramid scale."""
    N, C, D, H, W = x_ncdhw.shape
    classes = w_semseg.shape[1]
    DHW = D * H * W

    # Free view of the native NCDHW layout: (N, C, DHW).
    x = x_ncdhw.reshape(N, C, DHW)
    wt_t = jnp.transpose(w_tsdf)       # (1, C)
    ws_t = jnp.transpose(w_semseg)     # (classes, C)

    ts = _spatial_tile(DHW, max_spatial_tile)
    num_tiles = -(-DHW // ts)
    dhw_p = num_tiles * ts
    if dhw_p != DHW:
        x = jnp.pad(x, ((0, 0), (0, 0), (0, dhw_p - DHW)))

    tsdf, sem = pl.pallas_call(
        functools.partial(_heads_kernel, label_smoothing=label_smoothing),
        out_shape=(
            jax.ShapeDtypeStruct((N, 1, dhw_p), jnp.float32),
            jax.ShapeDtypeStruct((N, classes, dhw_p), jnp.float32),
        ),
        grid_spec=pltpu.PrefetchScalarGridSpec(
            num_scalar_prefetch=0,
            grid=(N, num_tiles),
            in_specs=[
                pl.BlockSpec((None, C, ts), lambda n, s: (n, 0, s)),
                pl.BlockSpec((1, C), lambda n, s: (0, 0)),
                pl.BlockSpec((classes, C), lambda n, s: (0, 0)),
            ],
            out_specs=[
                pl.BlockSpec((None, 1, ts), lambda n, s: (n, 0, s)),
                pl.BlockSpec((None, classes, ts), lambda n, s: (n, 0, s)),
            ],
        ),
        compiler_params=pltpu.CompilerParams(
            dimension_semantics=("parallel", "parallel"),
        ),
    )(x, wt_t, ws_t)

    if dhw_p != DHW:
        tsdf = tsdf[:, :, :DHW]
        sem = sem[:, :, :DHW]
    tsdf = tsdf.reshape(N, 1, D, H, W)
    sem = sem.reshape(N, classes, D, H, W)
    return tsdf, sem


# ------------------------------ module wrapper --------------------------------
def voxel_heads_forward(xs, params):
    """VoxelHeads.forward(xs, targets=None) — multi-scale TSDF + semseg heads."""
    outputs = {}
    losses = {}  # targets=None => no losses computed (matches the module)
    for voxel_size, (w_tsdf, w_sem), x in zip(VOXEL_SIZES, params, xs):
        tsdf, semseg = _run_scale(
            x, w_tsdf, w_sem, label_smoothing=LABEL_SMOOTHING
        )
        outputs["vol_%02d_tsdf" % voxel_size] = tsdf
        outputs["vol_%02d_semseg" % voxel_size] = semseg
    # TODO(synk): LOSS_SPLIT='pred' forward-time overwrite of fine-scale tsdf
    # from the upsampled coarse prediction is not implemented (config='none').
    return outputs, losses


# ---------------------------------- main --------------------------------------
if __name__ == "__main__":
    key = jax.random.PRNGKey(0)
    k_feats, k_w = jax.random.split(key)

    # Feature pyramid (coarse -> fine), NCDHW like the torch module expects.
    N = 2
    spatials = [4, 8]  # coarse scale (C=64), fine scale (C=32)
    xs = []
    for i, (c, s) in enumerate(zip(DECODER_CHANNELS, spatials)):
        k_feats, sub = jax.random.split(k_feats)
        xs.append(jax.random.normal(sub, (N, c, s, s, s), dtype=jnp.float32))

    # Deterministic decoder weights (Conv3d 1x1x1, no bias) stored as (C, out).
    params = []
    for c in DECODER_CHANNELS:
        k_w, k1, k2 = jax.random.split(k_w, 3)
        w_tsdf = jax.random.normal(k1, (c, 1), dtype=jnp.float32) * 0.05
        w_sem = jax.random.normal(k2, (c, NUM_CLASSES), dtype=jnp.float32) * 0.05
        params.append((w_tsdf, w_sem))

    outputs, losses = voxel_heads_forward(xs, params)
    jax.block_until_ready(outputs)

    # Pure-JAX reference check of the forward semantics.
    ok = True
    for voxel_size, (w_tsdf, w_sem), x in zip(VOXEL_SIZES, params, xs):
        tsdf_ref = (
            jnp.tanh(jnp.einsum("ncdhw,co->nodhw", x, w_tsdf)) * LABEL_SMOOTHING
        )
        sem_ref = jnp.einsum("ncdhw,co->nodhw", x, w_sem)
        ok &= bool(
            jnp.allclose(
                outputs["vol_%02d_tsdf" % voxel_size], tsdf_ref, atol=1e-5
            )
        )
        ok &= bool(
            jnp.allclose(
                outputs["vol_%02d_semseg" % voxel_size], sem_ref, atol=1e-5
            )
        )
    assert ok, "Pallas output mismatch vs reference"
    assert losses == {}

    print("KERNEL_OK")
</pallas_src>

<mosaic_0001>
module attributes {stable_mosaic.version = 11 : i64} {
  func.func @_heads_kernel(%arg0: i32, %arg1: i32, %arg2: memref<1x64x64xf32, #tpu.memory_space<vmem>>, %arg3: memref<1x64xf32, #tpu.memory_space<vmem>>, %arg4: memref<8x64xf32, #tpu.memory_space<vmem>>, %arg5: memref<1x1x64xf32, #tpu.memory_space<vmem>>, %arg6: memref<1x8x64xf32, #tpu.memory_space<vmem>>) attributes {dimension_semantics = [#tpu.dimension_semantics<parallel>, #tpu.dimension_semantics<parallel>], iteration_bounds = array<i64: 2, 1>, scalar_prefetch = 0 : i64, scratch_operands = 0 : i64, tpu.core_type = #tpu.core_type<tc>, window_params = [{transform_indices = @transform_0, window_bounds = array<i64: 1, 64, 64>}, {pipeline_mode = #tpu.pipeline_mode<synchronous>, transform_indices = @transform_1, window_bounds = array<i64: 1, 64>}, {pipeline_mode = #tpu.pipeline_mode<synchronous>, transform_indices = @transform_2, window_bounds = array<i64: 8, 64>}, {transform_indices = @transform_3, window_bounds = array<i64: 1, 1, 64>}, {transform_indices = @transform_4, window_bounds = array<i64: 1, 8, 64>}]} {
    %c0 = arith.constant 0 : index
    %c0_0 = arith.constant 0 : index
    %c0_1 = arith.constant 0 : index
    %0 = vector.load %arg2[%c0, %c0_0, %c0_1] : memref<1x64x64xf32, #tpu.memory_space<vmem>>, vector<1x64x64xf32>
    %1 = vector.shape_cast %0 : vector<1x64x64xf32> to vector<64x64xf32>
    %c0_2 = arith.constant 0 : index
    %c0_3 = arith.constant 0 : index
    %2 = vector.load %arg3[%c0_2, %c0_3] : memref<1x64xf32, #tpu.memory_space<vmem>>, vector<1x64xf32>
    %cst = arith.constant dense<0.000000e+00> : vector<1x64xf32>
    %3 = tpu.matmul %2, %1, %cst {dimension_numbers = #tpu.dot_dimension_numbers<[1], [0], [0], [1], [0, 0, 1, 1], [], []>} : vector<1x64xf32>, vector<64x64xf32>, vector<1x64xf32> -> vector<1x64xf32>
    %c0_4 = arith.constant 0 : index
    %c0_5 = arith.constant 0 : index
    %4 = vector.load %arg4[%c0_4, %c0_5] : memref<8x64xf32, #tpu.memory_space<vmem>>, vector<8x64xf32>
    %cst_6 = arith.constant dense<0.000000e+00> : vector<8x64xf32>
    %5 = tpu.matmul %4, %1, %cst_6 {dimension_numbers = #tpu.dot_dimension_numbers<[1], [0], [0], [1], [0, 0, 1, 1], [], []>} : vector<8x64xf32>, vector<64x64xf32>, vector<8x64xf32> -> vector<8x64xf32>
    %6 = math.tanh %3 : vector<1x64xf32>
    %cst_7 = arith.constant 1.050000e+00 : f32
    %7 = vector.broadcast %cst_7 : f32 to vector<1x64xf32>
    %8 = arith.mulf %6, %7 : vector<1x64xf32>
    %c0_8 = arith.constant 0 : index
    %c0_9 = arith.constant 0 : index
    %c0_10 = arith.constant 0 : index
    %9 = vector.load %arg5[%c0_8, %c0_9, %c0_10] : memref<1x1x64xf32, #tpu.memory_space<vmem>>, vector<1x1x64xf32>
    %10 = vector.shape_cast %9 : vector<1x1x64xf32> to vector<1x64xf32>
    %11 = vector.shape_cast %8 : vector<1x64xf32> to vector<1x1x64xf32>
    tpu.vector_store %arg5[%c0_8, %c0_9, %c0_10], %11 {strides = array<i32>} : memref<1x1x64xf32, #tpu.memory_space<vmem>>, vector<1x1x64xf32>,
    %c0_11 = arith.constant 0 : index
    %c0_12 = arith.constant 0 : index
    %c0_13 = arith.constant 0 : index
    %12 = vector.load %arg6[%c0_11, %c0_12, %c0_13] : memref<1x8x64xf32, #tpu.memory_space<vmem>>, vector<1x8x64xf32>
    %13 = vector.shape_cast %12 : vector<1x8x64xf32> to vector<8x64xf32>
    %14 = vector.shape_cast %5 : vector<8x64xf32> to vector<1x8x64xf32>
    tpu.vector_store %arg6[%c0_11, %c0_12, %c0_13], %14 {strides = array<i32>} : memref<1x8x64xf32, #tpu.memory_space<vmem>>, vector<1x8x64xf32>,
    return
  }
  func.func @transform_0(%arg0: i32, %arg1: i32) -> (i32, i32, i32) {
    %c0_i32 = arith.constant 0 : i32
    %c0_i32_0 = arith.constant 0 : i32
    return %arg0, %c0_i32, %arg1 : i32, i32, i32
  }
  func.func @transform_1(%arg0: i32, %arg1: i32) -> (i32, i32) {
    %c0_i32 = arith.constant 0 : i32
    %c0_i32_0 = arith.constant 0 : i32
    %c0_i32_1 = arith.constant 0 : i32
    return %c0_i32, %c0_i32_0 : i32, i32
  }
  func.func @transform_2(%arg0: i32, %arg1: i32) -> (i32, i32) {
    %c0_i32 = arith.constant 0 : i32
    %c0_i32_0 = arith.constant 0 : i32
    %c0_i32_1 = arith.constant 0 : i32
    return %c0_i32, %c0_i32_0 : i32, i32
  }
  func.func @transform_3(%arg0: i32, %arg1: i32) -> (i32, i32, i32) {
    %c0_i32 = arith.constant 0 : i32
    %c0_i32_0 = arith.constant 0 : i32
    return %arg0, %c0_i32, %arg1 : i32, i32, i32
  }
  func.func @transform_4(%arg0: i32, %arg1: i32) -> (i32, i32, i32) {
    %c0_i32 = arith.constant 0 : i32
    %c0_i32_0 = arith.constant 0 : i32
    return %arg0, %c0_i32, %arg1 : i32, i32, i32
  }
}

</mosaic_0001>

<bundles_post_ra>
// kernel: tpu_custom_call.1
= control target key start
LH: loop header
LB: loop body
LE: loop exit
PB: predicated region body
PF: predicated region fallthrough
CT: control target
= control target key end

     0   :  { %s1028_s0 = inlined_call_operand.hbm [shape: f32[2,64,64], index: 0, kind: input, shape index: {}]   ;;  %s1029_s1 = inlined_call_operand.hbm [shape: f32[1,64], index: 1, kind: input, shape index: {}]   ;;  %s1030_s2 = inlined_call_operand.hbm [shape: f32[8,64], index: 2, kind: input, shape index: {}]   ;;  %s1031_s3 = inlined_call_operand.hbm [shape: f32[2,1,64], index: 3, kind: output, shape index: {0}]   ;;  %s1032_s4 = inlined_call_operand.hbm [shape: f32[2,8,64], index: 4, kind: output, shape index: {1}]  }
   0x1   :  { %1033 = sst [smem:[#allocation15_spill]] %s1029_s1 }
   0x2   :  { %1034 = sst [smem:[#allocation16_spill]] %s1030_s2 }
   0x3   :  { %10 = vsyncpa [#allocation3], 0 }
   0x4   :  { %12 = vsyncpa [#allocation3 + $0x1], 0 }
   0x5   :  { %13 = vsyncpa [#allocation6], 0 }
   0x6   :  { %14 = vsyncpa [#allocation4], 0 }
   0x7   :  { %16 = vsyncpa [#allocation4 + $0x1], 0 }
   0x8   :  { %17 = vsyncpa [#allocation10], 0 }
   0x9   :  { %19 = vsyncpa [#allocation10 + $0x1], 0  ;;  %s854_s15 = smov 0   ;;  %s856_s16 = smov 0  }
   0xa   :  { %s858_s17 = smov 0   ;;  %s860_s18 = smov 0  }
   0xb   :  { %s862_s19 = smov 0   ;;  %s864_s20 = smov 0  }
   0xc LB: > { %s502_s21 = sadd.s32 4294967295, %s823_s20   ;;  %s503_s22 = sadd.s32 4294967294, %s823_s20   ;;  %s823_s20 = sphi %s864_s20, %s25_s20   ;;  %s819_s19 = sphi %s862_s19, %s1048_s19   ;;  %s815_s18 = sphi %s860_s18, %s1047_s18   ;;  %s811_s17 = sphi %s858_s17, %s1046_s17   ;;  %s807_s16 = sphi %s856_s16, %s1045_s16   ;;  %s803_s15 = sphi %s854_s15, %s1044_s15  }
   0xd   : > { %s46_s23 = sadd.s32 1, %s811_s17  ;;  %p53_p0 = scmp.ne.s32.totalorder %s811_s17, %s807_s16 }
   0xe   : > { %p54_p1 = scmp.eq.s32.totalorder %s823_s20, 0  ;;  %p59_p2 = scmp.ne.s32.totalorder %s807_s16, %s803_s15 }
   0xf   : > { %p892_p3 = scmp.eq.s32.totalorder %s502_s21, 0  ;;  %p127_p4 = scmp.eq.s32.totalorder %s502_s21, 1 }
  0x10   : > { %p896_p5 = por %p54_p1, %p53_p0  ;;  %p133_p6 = scmp.eq.s32.totalorder %s503_s22, 1 }
  0x11   : > { %p902_p7 = por %p892_p3, %p59_p2  ;;  %p906_p8 = por %p127_p4, %p53_p0 }
  0x12   : > { %p910_p9 = por %p133_p6, %p59_p2  ;;  %p504_p10 = scmp.ge.s32.totalorder %s823_s20, 1 }
  0x13   : > { %p168_p11 = scmp.lt.s32.totalorder %s823_s20, 3  ;;  %s1040_s1 = sld [smem:[#allocation15_spill]] }
  0x14   : > { %s825_s7 = smov [#allocation5]   ;;  %p507_p13 = scmp.ge.s32.totalorder %s823_s20, 2 }
  0x15   : > { %p919_p12 = pnand %p504_p10, %p168_p11  ;;  %s182_s8 = sshll.u32 %s825_s7, 4  ;;  %s183_s8 = int_to_ptr.vmem [resolvable:$true] %s182_s8 }
  0x16   : > { %p557_p1 = scmp.lt.s32.totalorder %s823_s20, 2  ;;  %s1042_s2 = sld [smem:[#allocation16_spill]] }
  0x17   : > { %p537_p0 = pneg %p919_p12  ;;  %s826_s13 = smov [#allocation7]  }
  0x18   : > { %p934_p4 = pnand %p557_p1, %p896_p5  ;;  %s194_s14 = sshll.u32 %s826_s13, 4  ;;  %s195_s14 = int_to_ptr.vmem [resolvable:$true] %s194_s14 }
  0x19   : > { %s180_s5 = sshll.u32 %s1040_s1, 4  ;;  %p538_p2 = pnand %p537_p0, %p892_p3  ;;  %s181_s5 = int_to_ptr.hbm [resolvable:$true] %s180_s5 }
  0x1a   : > { %s205_s21 = sand.u32 1, %s811_s17   ;;  %s37_s22 = sadd.s32 1, %s819_s19 }
  0x1b   : > { %540 = dma.hbm_to_vmem [thread:$0]  (!%p538_p2), %s181_s5, 16, %s183_s8, [#allocation6]  }
  0x1c   : > { %s192_s11 = sshll.u32 %s1042_s2, 4  ;;  %s508_s29 = sshll.u32 %s205_s21, 6  ;;  %s193_s11 = int_to_ptr.hbm [resolvable:$true] %s192_s11 }
  0x1d   : > { %543 = dma.hbm_to_vmem [thread:$0]  (!%p538_p2), %s193_s11, 128, %s195_s14, [#allocation6]  }
  0x1e   : > { %p39_p6 = scmp.ge.s32.totalorder %s37_s22, 2  ;;  %s522_s30 = sshll.u32 %s819_s19, 6 }
  0x1f   : > { %s209_s7 = scalar_lea.vmem [#allocation2], %s508_s29  ;;  %s215_s13 = scalar_lea.hbm %s1028_s0, %s522_s30 }
  0x20   : > { %s218_s25 = sshll.u32 %s209_s7, 4  ;;  %s1050_s22 = smov (%p39_p6, %s37_s22), 0  ;;  %s219_s25 = int_to_ptr.vmem [resolvable:$true] %s218_s25 }
  0x21   : > { %s41_s5 = ssub.s32 %s819_s19, %s1050_s22  ;;  %s216_s8 = sshll.u32 %s215_s13, 4  ;;  %s217_s8 = int_to_ptr.hbm [resolvable:$true] %s216_s8 }
  0x22   : > { %p44_p5 = scmp.eq.s32.totalorder %s41_s5, 0  ;;  %s206_s14 = scalar_lea.sflag [#allocation3], %s205_s21 }
  0x23   : > { %s827_s1 = smov 128   ;;  %s828_s2 = smov 8  }
  0x24   : > { %s951_s11 = scalar_select %p44_p5, %s811_s17, %s46_s23  }
  0x25   : > { %547 = dma.hbm_to_vmem [thread:$0]  (!%p934_p4), %s217_s8, 1024, %s219_s25, %s206_s14, %s827_s1, %s827_s1, %s828_s2  }
  0x26   : > { %230 = sbr.rel (%p919_p12) target bundleno = 205 (0xcd), region = 32  ;;  %s958_s29 = sand.u32 (!%p919_p12), 1, %s807_s16  }
  0x27   : > { %s512_s30 = sshll.u32 (!%p919_p12), %s958_s29, 6  ;;  %s233_s7 = scalar_lea.sflag (!%p919_p12), [#allocation3], %s958_s29 }
  0x28   : > { %s236_s9 = scalar_lea.vmem (!%p919_p12), [#allocation2], %s512_s30 }
  0x2b   : > { %786 = dma.done.wait (%p902_p7), %s233_s7, 1024  }
  0x2c   : > { %788 = vsyncadd (%p902_p7), %s233_s7, 4294966272 }
  0x2d   : > { %790 = dma.done.wait (%p892_p3), [#allocation6], 144  }
  0x2e   : > { %792 = vsyncadd (%p892_p3), [#allocation6], 4294967152  ;;  %v283_v0 = vld [vmem:[%s236_s9 + $0x38] sm:$0xff]  ;;  %v282_v1 = vld [vmem:[%s236_s9 + $0x30] sm:$0xff]  ;;  %vm285_vm0 = vcmask 523264   ;;  %s515_s1 = sshll.u32 %s958_s29, 3  ;;  %s353_s13 = scalar_lea.hbm %s1031_s3, %s815_s18 }
  0x2f   : > { %297 = vmatpush.msra.mxu0 %v283_v0  ;;  %321 = vmatpush.msra.mxu1 %v283_v0  ;;  %v281_v2 = vld [vmem:[%s236_s9 + $0x28] sm:$0xff]  ;;  %v280_v3 = vld [vmem:[%s236_s9 + $0x20] sm:$0xff]  ;;  %v279_v4 = vld [vmem:[%s236_s9 + $0x18] sm:$0xff]  ;;  %s519_s2 = sshll.u32 %s815_s18, 3  ;;  %s275_s6 = scalar_lea.vmem [#allocation9], %s515_s1 }
  0x30   : > { %v278_v5 = vld [vmem:[%s236_s9 + $0x10] sm:$0xff]  ;;  %v277_v6 = vld [vmem:[%s236_s9 + $0x8] sm:$0xff]  ;;  %v276_v7 = vld [vmem:[%s236_s9] sm:$0xff]  ;;  %s368_s26 = scalar_lea.hbm %s1032_s4, %s519_s2  ;;  %s370_s12 = sshll.u32 %s275_s6, 4  ;;  %s371_s12 = int_to_ptr.vmem [resolvable:$true] %s370_s12 }
  0x31   : > { %298 = vmatpush.msra.mxu0 %v282_v1  ;;  %322 = vmatpush.msra.mxu1 %v282_v1  ;;  %v284_v8 = vld [vmem:[#allocation5] sm:$0x1]  ;;  %v309_v9 = vld [vmem:[#allocation7] sm:$0xff]  ;;  %s372_s21 = sshll.u32 %s368_s26, 4  ;;  %s343_s5 = scalar_lea.sflag [#allocation10], %s958_s29  ;;  %s373_s21 = int_to_ptr.hbm [resolvable:$true] %s372_s21 }
  0x32   : > { %s719_s8 = sshra.s32 %s373_s21, 4  ;;  %s725_s9 = scalar_lea.hbm %s1032_s4, 16  ;;  %s720_s8 = int_to_ptr.hbm [resolvable:$true] %s719_s8 }
  0x33   : > { %299 = vmatpush.msra.mxu0 %v281_v2  ;;  %323 = vmatpush.msra.mxu1 %v281_v2  ;;  %s721_s14 = scalar_lea.hbm %s720_s8, 8  ;;  %p726_p11 = scmp.lt.s32.totalorder %s720_s8, %s1032_s4 }
  0x34   : > { %p722_p3 = scmp.ne.s32.totalorder %s720_s8, %s721_s14  ;;  %p727_p12 = scmp.lt.s32.totalorder %s725_s9, %s721_s14 }
  0x35   : > { %300 = vmatpush.msra.mxu0 %v280_v3  ;;  %324 = vmatpush.msra.mxu1 %v280_v3 }
  0x36   : > { %p723_p7 = pnand %p722_p3, %p906_p8  ;;  %p728_p0 = por %p727_p12, %p726_p11 }
  0x37   : > { %301 = vmatpush.msra.mxu0 %v279_v4  ;;  %325 = vmatpush.msra.mxu1 %v279_v4 }
  0x38   : > { %p724_p10 = pneg %p723_p7 }
  0x39   : > { %302 = vmatpush.msra.mxu0 %v278_v5  ;;  %326 = vmatpush.msra.mxu1 %v278_v5 }
  0x3a   : > { %p729_p1 = pnand %p728_p0, %p724_p10 }
  0x3b   : > { %303 = vmatpush.msra.mxu0 %v277_v6  ;;  %327 = vmatpush.msra.mxu1 %v277_v6 }
  0x3d   : > { %304 = vmatpush.msra.mxu0 %v276_v7  ;;  %328 = vmatpush.msra.mxu1 %v276_v7 }
  0x3e   : > { %516 = vmatmul.msk.f32.vlgmr.msra.gmra.mxu0 %vm285_vm0, %v284_v8  ;;  %517 = vmatmul.msk.f32.vlgmr.msra.gmra.mxu1 %vm285_vm0, %v309_v9 }
  0xbb   : > { %v306_v10 = vpop.f32.mrf.mxu0  ;;  %v330_v11 = vpop.f32.mrf.mxu1 }
  0xbc   : > { %613 = vtanh.f32 %v306_v10  ;;  %337 = vst.msk [vmem:[%s275_s6] sm:$0xff] %vm285_vm0, %v330_v11 }
  0xbd   : > { %732 = shalt.err (!%p729_p1)
}
  0xbe   : > { %534 = dma.vmem_to_hbm [thread:$0]  (%p906_p8), %s371_s12, 128, %s373_s21, %s343_s5   ;;  %vm335_vm1 = vcmask 516096  }
  0xbf   : > { %s268_s18 = scalar_lea.vmem [#allocation8], %s958_s29  ;;  %s357_s24 = sshll.u32 %s353_s13, 4  ;;  %s358_s24 = int_to_ptr.hbm [resolvable:$true] %s357_s24 }
  0xc0   : > { %s355_s23 = sshll.u32 %s268_s18, 4  ;;  %s339_s26 = scalar_lea.sflag [#allocation4], %s958_s29  ;;  %s356_s23 = int_to_ptr.vmem [resolvable:$true] %s355_s23 }
  0xc1   : > { %s747_s6 = sshra.s32 %s358_s24, 4  ;;  %s753_s12 = scalar_lea.hbm %s1031_s3, 2  ;;  %s748_s6 = int_to_ptr.hbm [resolvable:$true] %s747_s6 }
  0xc2   : > { %v614_v12 = vpop.eup %613  ;;  %s749_s25 = scalar_lea.hbm %s748_s6, 1  ;;  %p754_p5 = scmp.lt.s32.totalorder %s748_s6, %s1031_s3 }
  0xc3   : > { %v334_v13 = vmul.f32 1.05, %v614_v12  ;;  %p750_p2 = scmp.ne.s32.totalorder %s748_s6, %s749_s25  ;;  %p755_p3 = scmp.lt.s32.totalorder %s753_s12, %s749_s25 }
  0xc5   : > { %336 = vst.msk [vmem:[%s268_s18] sm:$0x1] %vm335_vm1, %v334_v13  ;;  %p751_p4 = pnand %p750_p2, %p906_p8  ;;  %p756_p7 = por %p755_p3, %p754_p5 }
  0xc7   : > { %p752_p6 = pneg %p751_p4 }
  0xc9   : > { %p757_p10 = pnand %p756_p7, %p752_p6 }
  0xcb   : > { %760 = shalt.err (!%p757_p10)
}
  0xcc   : > { %533 = dma.vmem_to_hbm [thread:$0]  (%p906_p8), %s356_s23, 16, %s358_s24, %s339_s26  }
  0xcd PF: > { %s384_s29 = sand.u32 1, %s803_s15   ;;  %p549_p11 = pnand %p507_p13, %p910_p9 }
  0xce   : > { %s385_s5 = scalar_lea.sflag [#allocation4], %s384_s29 }
  0xcf   : > { %p550_p12 = pneg %p549_p11 }
  0xd1   : > { %794 = dma.done.wait (%p550_p12), %s385_s5, 16  }
  0xd2   : > { %796 = vsyncadd (%p550_p12), %s385_s5, 4294967280  ;;  %s394_s14 = scalar_lea.sflag [#allocation10], %s384_s29 }
  0xd3   : > { %798 = dma.done.wait (%p550_p12), %s394_s14, 128  }
  0xd4   : > { %800 = vsyncadd (%p550_p12), %s394_s14, 4294967168  ;;  %s25_s20 = sadd.s32 1, %s823_s20   ;;  %s1044_s15 = smov %s807_s16 }
  0xd5   : > { %p22_p0 = scmp.ge.s32.totalorder %s25_s20, 4   ;;  %s1045_s16 = smov %s811_s17 }
  0xd6   : > { %s1046_s17 = smov %s951_s11  ;;  %s1047_s18 = smov %s819_s19 }
  0xd7   : > { %s1048_s19 = smov %s1050_s22  ;;  %24 = sbr.rel (!%p22_p0) target bundleno = 12 (0xc), region = 102 }
  0xdc   :  { %400 = vsyncpa [#allocation3], 1 }
  0xdd   :  { %402 = vsyncpa [#allocation3 + $0x1], 1 }
  0xde   :  { %403 = vsyncpa [#allocation6], 1 }
  0xdf   :  { %404 = vsyncpa [#allocation4], 1 }
  0xe0   :  { %406 = vsyncpa [#allocation4 + $0x1], 1 }
  0xe1   :  { %407 = vsyncpa [#allocation10], 1 }
  0xe2   :  { %409 = vsyncpa [#allocation10 + $0x1], 1 }

</bundles_post_ra>
